<compile_context>
chip_gen: v7x
topology: tpu7x:2x2x1
jax: 0.10.0
libtpu: 0.0.40
codegen_flags: <defaults>
</compile_context>

<pallas_src>
import jax
import jax.numpy as jnp
from jax.experimental import pallas as pl
from jax.experimental.pallas import tpu as pltpu

_LANE = 128
_SUBLANE = 8
_MAX_BATCH_TILE = 512  # rows per grid step; sized against v7x 32 MiB scoped VMEM


def _round_up(n, m):
    return ((n + m - 1) // m) * m


def _pad2(a, rows, cols):
    """Zero-pad a 2-D array up to (rows, cols)."""
    return jnp.pad(a, ((0, rows - a.shape[0]), (0, cols - a.shape[1])))


def _mlp_kernel(x_ref, w1_ref, b1_ref, w2_ref, b2_ref,
                w3_ref, b3_ref, w4_ref, b4_ref, o_ref):
    # Fused hot path: 4 chained MXU matmuls + bias adds (VPU), all fp32.
    # Every K and N is a multiple of 128, so MXU tiles are clean and the
    # final store is lane-dense.
    h = jnp.dot(x_ref[...], w1_ref[...],
                preferred_element_type=jnp.float32) + b1_ref[...]
    h = jnp.dot(h, w2_ref[...],
                preferred_element_type=jnp.float32) + b2_ref[...]
    h = jnp.dot(h, w3_ref[...],
                preferred_element_type=jnp.float32) + b3_ref[...]
    o_ref[...] = (jnp.dot(h, w4_ref[...],
                          preferred_element_type=jnp.float32) + b4_ref[...]
                  ).astype(o_ref.dtype)


@jax.jit
def linear_regression_forward(x, params):
    """x: (batch, in_size) fp32.  params: w1..w4 as (in, out), b1..b4 as (1, out)."""
    batch, in_size = x.shape
    out_size = params["w4"].shape[1]

    # Lane-aligned (padded) layer widths.
    in_p = _round_up(in_size, _LANE)                     # 32  -> 128
    h1_p = _round_up(params["w1"].shape[1], _LANE)       # 100 -> 128
    h2_p = _round_up(params["w2"].shape[1], _LANE)       # 300 -> 384
    h3_p = _round_up(params["w3"].shape[1], _LANE)       # 100 -> 128
    out_p = _round_up(out_size, _LANE)                   # 8   -> 128

    # Zero-pad weights (rows & cols) and biases (lanes) once; padded rows/cols
    # are zero so the valid lanes are numerically identical.
    w1 = _pad2(params["w1"], in_p, h1_p)
    b1 = _pad2(params["b1"], 1, h1_p)
    w2 = _pad2(params["w2"], h1_p, h2_p)
    b2 = _pad2(params["b2"], 1, h2_p)
    w3 = _pad2(params["w3"], h2_p, h3_p)
    b3 = _pad2(params["b3"], 1, h3_p)
    w4 = _pad2(params["w4"], h3_p, out_p)
    b4 = _pad2(params["b4"], 1, out_p)

    # Batch tiling: pad batch to a sublane-aligned tile, grid over it so large
    # batches get pipelined x/out DMAs and (on multi-TC parts) core sharding.
    tb = min(_round_up(batch, _SUBLANE), _MAX_BATCH_TILE)
    batch_p = _round_up(batch, tb)
    x_p = _pad2(x, batch_p, in_p)

    const_map = lambda i: (0, 0)   # weights/biases stay resident across steps
    row_map = lambda i: (i, 0)     # x/out tiled over batch

    out_padded = pl.pallas_call(
        _mlp_kernel,
        out_shape=jax.ShapeDtypeStruct((batch_p, out_p), x.dtype),
        grid_spec=pltpu.PrefetchScalarGridSpec(
            num_scalar_prefetch=0,
            grid=(batch_p // tb,),
            in_specs=[
                pl.BlockSpec((tb, in_p), row_map),
                pl.BlockSpec((in_p, h1_p), const_map),
                pl.BlockSpec((1, h1_p), const_map),
                pl.BlockSpec((h1_p, h2_p), const_map),
                pl.BlockSpec((1, h2_p), const_map),
                pl.BlockSpec((h2_p, h3_p), const_map),
                pl.BlockSpec((1, h3_p), const_map),
                pl.BlockSpec((h3_p, out_p), const_map),
                pl.BlockSpec((1, out_p), const_map),
            ],
            out_specs=pl.BlockSpec((tb, out_p), row_map),
        ),
        compiler_params=pltpu.CompilerParams(
            dimension_semantics=("parallel",)),
    )(x_p, w1, b1, w2, b2, w3, b3, w4, b4)

    # Slice off padded batch rows and padded output lanes.
    return out_padded[:batch, :out_size]


def init_params(key, input_size, output_size):
    """Deterministic init mimicking torch.nn.Linear: U(-1/sqrt(fan_in), +1/sqrt(fan_in)).

    Weights stored pre-transposed to (in, out); biases as (1, out) — logical
    (unpadded) shapes; padding happens once in the wrapper.
    """
    dims = [(input_size, 100), (100, 300), (300, 100), (100, output_size)]
    params = {}
    for idx, (fan_in, fan_out) in enumerate(dims, start=1):
        key, kw, kb = jax.random.split(key, 3)
        bound = 1.0 / jnp.sqrt(jnp.float32(fan_in))
        params[f"w{idx}"] = jax.random.uniform(
            kw, (fan_in, fan_out), jnp.float32, minval=-bound, maxval=bound)
        params[f"b{idx}"] = jax.random.uniform(
            kb, (1, fan_out), jnp.float32, minval=-bound, maxval=bound)
    return params


def reference_forward(x, params):
    h = x @ params["w1"] + params["b1"]
    h = h @ params["w2"] + params["b2"]
    h = h @ params["w3"] + params["b3"]
    return h @ params["w4"] + params["b4"]


if __name__ == "__main__":
    input_size = 32
    output_size = 8
    batch = 8

    key = jax.random.PRNGKey(0)
    key, kx = jax.random.split(key)
    x = jax.random.normal(kx, (batch, input_size), jnp.float32)
    params = init_params(key, input_size, output_size)

    out = linear_regression_forward(x, params)
    out = jax.block_until_ready(out)

    ref = reference_forward(x, params)
    assert out.shape == (batch, output_size)
    assert jnp.allclose(out, ref, atol=1e-4, rtol=1e-4)

    print("KERNEL_OK")
</pallas_src>

<mosaic_0001>
module attributes {stable_mosaic.version = 11 : i64} {
  func.func @_mlp_kernel(%arg0: i32, %arg1: memref<8x128xf32, #tpu.memory_space<vmem>>, %arg2: memref<128x128xf32, #tpu.memory_space<vmem>>, %arg3: memref<1x128xf32, #tpu.memory_space<vmem>>, %arg4: memref<128x384xf32, #tpu.memory_space<vmem>>, %arg5: memref<1x384xf32, #tpu.memory_space<vmem>>, %arg6: memref<384x128xf32, #tpu.memory_space<vmem>>, %arg7: memref<1x128xf32, #tpu.memory_space<vmem>>, %arg8: memref<128x128xf32, #tpu.memory_space<vmem>>, %arg9: memref<1x128xf32, #tpu.memory_space<vmem>>, %arg10: memref<8x128xf32, #tpu.memory_space<vmem>>) attributes {dimension_semantics = [#tpu.dimension_semantics<parallel>], iteration_bounds = array<i64: 1>, scalar_prefetch = 0 : i64, scratch_operands = 0 : i64, tpu.core_type = #tpu.core_type<tc>, window_params = [{transform_indices = @transform_0, window_bounds = array<i64: 8, 128>}, {pipeline_mode = #tpu.pipeline_mode<synchronous>, transform_indices = @transform_1, window_bounds = array<i64: 128, 128>}, {pipeline_mode = #tpu.pipeline_mode<synchronous>, transform_indices = @transform_2, window_bounds = array<i64: 1, 128>}, {pipeline_mode = #tpu.pipeline_mode<synchronous>, transform_indices = @transform_3, window_bounds = array<i64: 128, 384>}, {pipeline_mode = #tpu.pipeline_mode<synchronous>, transform_indices = @transform_4, window_bounds = array<i64: 1, 384>}, {pipeline_mode = #tpu.pipeline_mode<synchronous>, transform_indices = @transform_5, window_bounds = array<i64: 384, 128>}, {pipeline_mode = #tpu.pipeline_mode<synchronous>, transform_indices = @transform_6, window_bounds = array<i64: 1, 128>}, {pipeline_mode = #tpu.pipeline_mode<synchronous>, transform_indices = @transform_7, window_bounds = array<i64: 128, 128>}, {pipeline_mode = #tpu.pipeline_mode<synchronous>, transform_indices = @transform_8, window_bounds = array<i64: 1, 128>}, {transform_indices = @transform_9, window_bounds = array<i64: 8, 128>}]} {
    %c0 = arith.constant 0 : index
    %c0_0 = arith.constant 0 : index
    %0 = vector.load %arg1[%c0, %c0_0] : memref<8x128xf32, #tpu.memory_space<vmem>>, vector<8x128xf32>
    %c0_1 = arith.constant 0 : index
    %c0_2 = arith.constant 0 : index
    %1 = vector.load %arg2[%c0_1, %c0_2] : memref<128x128xf32, #tpu.memory_space<vmem>>, vector<128x128xf32>
    %cst = arith.constant dense<0.000000e+00> : vector<8x128xf32>
    %2 = tpu.matmul %0, %1, %cst {dimension_numbers = #tpu.dot_dimension_numbers<[1], [0], [0], [1], [0, 0, 1, 1], [], []>} : vector<8x128xf32>, vector<128x128xf32>, vector<8x128xf32> -> vector<8x128xf32>
    %c0_3 = arith.constant 0 : index
    %c0_4 = arith.constant 0 : index
    %3 = vector.load %arg3[%c0_3, %c0_4] : memref<1x128xf32, #tpu.memory_space<vmem>>, vector<1x128xf32>
    %4 = vector.broadcast %3 : vector<1x128xf32> to vector<8x128xf32>
    %5 = arith.addf %2, %4 : vector<8x128xf32>
    %c0_5 = arith.constant 0 : index
    %c0_6 = arith.constant 0 : index
    %6 = vector.load %arg4[%c0_5, %c0_6] : memref<128x384xf32, #tpu.memory_space<vmem>>, vector<128x384xf32>
    %cst_7 = arith.constant dense<0.000000e+00> : vector<8x384xf32>
    %7 = tpu.matmul %5, %6, %cst_7 {dimension_numbers = #tpu.dot_dimension_numbers<[1], [0], [0], [1], [0, 0, 1, 1], [], []>} : vector<8x128xf32>, vector<128x384xf32>, vector<8x384xf32> -> vector<8x384xf32>
    %c0_8 = arith.constant 0 : index
    %c0_9 = arith.constant 0 : index
    %8 = vector.load %arg5[%c0_8, %c0_9] : memref<1x384xf32, #tpu.memory_space<vmem>>, vector<1x384xf32>
    %9 = vector.broadcast %8 : vector<1x384xf32> to vector<8x384xf32>
    %10 = arith.addf %7, %9 : vector<8x384xf32>
    %c0_10 = arith.constant 0 : index
    %c0_11 = arith.constant 0 : index
    %11 = vector.load %arg6[%c0_10, %c0_11] : memref<384x128xf32, #tpu.memory_space<vmem>>, vector<384x128xf32>
    %cst_12 = arith.constant dense<0.000000e+00> : vector<8x128xf32>
    %12 = tpu.matmul %10, %11, %cst_12 {dimension_numbers = #tpu.dot_dimension_numbers<[1], [0], [0], [1], [0, 0, 1, 1], [], []>} : vector<8x384xf32>, vector<384x128xf32>, vector<8x128xf32> -> vector<8x128xf32>
    %c0_13 = arith.constant 0 : index
    %c0_14 = arith.constant 0 : index
    %13 = vector.load %arg7[%c0_13, %c0_14] : memref<1x128xf32, #tpu.memory_space<vmem>>, vector<1x128xf32>
    %14 = vector.broadcast %13 : vector<1x128xf32> to vector<8x128xf32>
    %15 = arith.addf %12, %14 : vector<8x128xf32>
    %c0_15 = arith.constant 0 : index
    %c0_16 = arith.constant 0 : index
    %16 = vector.load %arg8[%c0_15, %c0_16] : memref<128x128xf32, #tpu.memory_space<vmem>>, vector<128x128xf32>
    %cst_17 = arith.constant dense<0.000000e+00> : vector<8x128xf32>
    %17 = tpu.matmul %15, %16, %cst_17 {dimension_numbers = #tpu.dot_dimension_numbers<[1], [0], [0], [1], [0, 0, 1, 1], [], []>} : vector<8x128xf32>, vector<128x128xf32>, vector<8x128xf32> -> vector<8x128xf32>
    %c0_18 = arith.constant 0 : index
    %c0_19 = arith.constant 0 : index
    %18 = vector.load %arg9[%c0_18, %c0_19] : memref<1x128xf32, #tpu.memory_space<vmem>>, vector<1x128xf32>
    %19 = vector.broadcast %18 : vector<1x128xf32> to vector<8x128xf32>
    %20 = arith.addf %17, %19 : vector<8x128xf32>
    %c0_20 = arith.constant 0 : index
    %c0_21 = arith.constant 0 : index
    %21 = vector.load %arg10[%c0_20, %c0_21] : memref<8x128xf32, #tpu.memory_space<vmem>>, vector<8x128xf32>
    tpu.vector_store %arg10[%c0_20, %c0_21], %20 {strides = array<i32>} : memref<8x128xf32, #tpu.memory_space<vmem>>, vector<8x128xf32>,
    return
  }
  func.func @transform_0(%arg0: i32) -> (i32, i32) {
    %c0_i32 = arith.constant 0 : i32
    %c0_i32_0 = arith.constant 0 : i32
    return %arg0, %c0_i32 : i32, i32
  }
  func.func @transform_1(%arg0: i32) -> (i32, i32) {
    %c0_i32 = arith.constant 0 : i32
    %c0_i32_0 = arith.constant 0 : i32
    %c0_i32_1 = arith.constant 0 : i32
    return %c0_i32, %c0_i32_0 : i32, i32
  }
  func.func @transform_2(%arg0: i32) -> (i32, i32) {
    %c0_i32 = arith.constant 0 : i32
    %c0_i32_0 = arith.constant 0 : i32
    %c0_i32_1 = arith.constant 0 : i32
    return %c0_i32, %c0_i32_0 : i32, i32
  }
  func.func @transform_3(%arg0: i32) -> (i32, i32) {
    %c0_i32 = arith.constant 0 : i32
    %c0_i32_0 = arith.constant 0 : i32
    %c0_i32_1 = arith.constant 0 : i32
    return %c0_i32, %c0_i32_0 : i32, i32
  }
  func.func @transform_4(%arg0: i32) -> (i32, i32) {
    %c0_i32 = arith.constant 0 : i32
    %c0_i32_0 = arith.constant 0 : i32
    %c0_i32_1 = arith.constant 0 : i32
    return %c0_i32, %c0_i32_0 : i32, i32
  }
  func.func @transform_5(%arg0: i32) -> (i32, i32) {
    %c0_i32 = arith.constant 0 : i32
    %c0_i32_0 = arith.constant 0 : i32
    %c0_i32_1 = arith.constant 0 : i32
    return %c0_i32, %c0_i32_0 : i32, i32
  }
  func.func @transform_6(%arg0: i32) -> (i32, i32) {
    %c0_i32 = arith.constant 0 : i32
    %c0_i32_0 = arith.constant 0 : i32
    %c0_i32_1 = arith.constant 0 : i32
    return %c0_i32, %c0_i32_0 : i32, i32
  }
  func.func @transform_7(%arg0: i32) -> (i32, i32) {
    %c0_i32 = arith.constant 0 : i32
    %c0_i32_0 = arith.constant 0 : i32
    %c0_i32_1 = arith.constant 0 : i32
    return %c0_i32, %c0_i32_0 : i32, i32
  }
  func.func @transform_8(%arg0: i32) -> (i32, i32) {
    %c0_i32 = arith.constant 0 : i32
    %c0_i32_0 = arith.constant 0 : i32
    %c0_i32_1 = arith.constant 0 : i32
    return %c0_i32, %c0_i32_0 : i32, i32
  }
  func.func @transform_9(%arg0: i32) -> (i32, i32) {
    %c0_i32 = arith.constant 0 : i32
    %c0_i32_0 = arith.constant 0 : i32
    return %arg0, %c0_i32 : i32, i32
  }
}

</mosaic_0001>

<bundles_post_ra>
// kernel: linear_regression_forward.1
= control target key start
LH: loop header
LB: loop body
LE: loop exit
PB: predicated region body
PF: predicated region fallthrough
CT: control target
= control target key end

     0   :  { %v1070_v3 = vmov 0.0|0.0   ;;  %vm1071_vm0 = vmmov 0   ;;  %v1072_v6 = vmov 0.0   ;;  %s1576_s0 = inlined_call_operand.vmem [shape: f32[8,128], index: 0, kind: input, shape index: {}]   ;;  %s1577_s1 = inlined_call_operand.vmem [shape: f32[128,128], index: 1, kind: input, shape index: {}]   ;;  %s1578_s2 = inlined_call_operand.vmem [shape: f32[1,128], index: 2, kind: input, shape index: {}]   ;;  %s1579_s3 = inlined_call_operand.vmem [shape: f32[128,384], index: 3, kind: input, shape index: {}]   ;;  %s1580_s4 = inlined_call_operand.vmem [shape: f32[1,384], index: 4, kind: input, shape index: {}]   ;;  %s1581_s5 = inlined_call_operand.vmem [shape: f32[384,128], index: 5, kind: input, shape index: {}]   ;;  %s1582_s6 = inlined_call_operand.vmem [shape: f32[1,128], index: 6, kind: input, shape index: {}]   ;;  %s1583_s7 = inlined_call_operand.vmem [shape: f32[128,128], index: 7, kind: input, shape index: {}]   ;;  %s1584_s8 = inlined_call_operand.vmem [shape: f32[1,128], index: 8, kind: input, shape index: {}]   ;;  %s1585_s9 = inlined_call_operand.hbm [shape: f32[8,128], index: 9, kind: output, shape index: {}]  }
   0x1   :  { %v34_v0 = vld [vmem:[%s1577_s1] sm:$0xff]  ;;  %v35_v1 = vld [vmem:[%s1577_s1 + $0x8] sm:$0xff]  ;;  %v36_v2 = vld [vmem:[%s1577_s1 + $0x10] sm:$0xff]  ;;  %882 = vmatprep.subr.bf16.mxu0 %v1070_v3  ;;  %774 = vmatprep.mubr.msk.f32.mxu0 %vm1071_vm0, %v1072_v6 }
   0x2   :  { %v883_v4 = vpack.c.bf16 %v35_v1, %v34_v0  ;;  %v37_v5 = vld [vmem:[%s1577_s1 + $0x18] sm:$0xff]  ;;  %256 = vmatprep.mubr.f32.mxu1 %v1072_v6  ;;  %v38_v8 = vld [vmem:[%s1577_s1 + $0x20] sm:$0xff]  ;;  %v39_v9 = vld [vmem:[%s1577_s1 + $0x28] sm:$0xff] }
   0x3   :  { %v886_v7 = vpack.c.bf16 %v37_v5, %v36_v2  ;;  %v128_v10 = vld [vmem:[%s1579_s3 + $0x8] sm:$0xff]  ;;  %v131_v11 = vld [vmem:[%s1579_s3 + $0x20] sm:$0xff]  ;;  %v130_v13 = vld [vmem:[%s1579_s3 + $0x18] sm:$0xff]  ;;  %v889_v14 = vpack.c.bf16 %v39_v9, %v38_v8 }
   0x4   :  { %884 = vmatpush3.bf16.msra.mxu0 %v883_v4  ;;  %v127_v12 = vld [vmem:[%s1579_s3] sm:$0xff]  ;;  %v40_v15 = vld [vmem:[%s1577_s1 + $0x30] sm:$0xff]  ;;  %v41_v16 = vld [vmem:[%s1577_s1 + $0x38] sm:$0xff]  ;;  %v906_v17 = vpack.c.bf16 %v131_v11, %v128_v10 }
   0x5   :  { %885 = vmatprep.subr.bf16.mxu0 %v1070_v3  ;;  %v908_v18 = vpack.c.bf16 %v130_v13, %v127_v12  ;;  %v134_v19 = vld [vmem:[%s1579_s3 + $0x38] sm:$0xff]  ;;  %v137_v20 = vld [vmem:[%s1579_s3 + $0x50] sm:$0xff]  ;;  %v136_v22 = vld [vmem:[%s1579_s3 + $0x48] sm:$0xff]  ;;  %v892_v27 = vpack.c.bf16 %v41_v16, %v40_v15 }
   0x6   :  { %v133_v21 = vld [vmem:[%s1579_s3 + $0x30] sm:$0xff]  ;;  %907 = vmatprep.subr.bf16.mxu1 %v906_v17  ;;  %v910_v23 = vpack.c.bf16 %v137_v20, %v134_v19  ;;  %v140_v24 = vld [vmem:[%s1579_s3 + $0x68] sm:$0xff]  ;;  %v143_v26 = vld [vmem:[%s1579_s3 + $0x80] sm:$0xff] }
   0x7   :  { %909 = vmatpush1.bf16.msra.mxu1 %v908_v18  ;;  %v912_v25 = vpack.c.bf16 %v136_v22, %v133_v21  ;;  %v42_v28 = vld [vmem:[%s1577_s1 + $0x40] sm:$0xff]  ;;  %v914_v29 = vpack.c.bf16 %v143_v26, %v140_v24  ;;  %v142_v31 = vld [vmem:[%s1579_s3 + $0x78] sm:$0xff]  ;;  %v43_v32 = vld [vmem:[%s1577_s1 + $0x48] sm:$0xff] }
   0x8   :  { %887 = vmatpush3.bf16.msra.mxu0 %v886_v7  ;;  %911 = vmatprep.subr.bf16.mxu1 %v910_v23  ;;  %v139_v30 = vld [vmem:[%s1579_s3 + $0x60] sm:$0xff]  ;;  %v146_v33 = vld [vmem:[%s1579_s3 + $0x98] sm:$0xff]  ;;  %v149_v34 = vld [vmem:[%s1579_s3 + $0xb0] sm:$0xff]  ;;  %v895_v36 = vpack.c.bf16 %v43_v32, %v42_v28 }
   0x9   :  { %888 = vmatprep.subr.bf16.mxu0 %v1070_v3  ;;  %v916_v35 = vpack.c.bf16 %v142_v31, %v139_v30  ;;  %v44_v37 = vld [vmem:[%s1577_s1 + $0x50] sm:$0xff]  ;;  %v918_v38 = vpack.c.bf16 %v149_v34, %v146_v33  ;;  %v148_v40 = vld [vmem:[%s1579_s3 + $0xa8] sm:$0xff]  ;;  %v45_v41 = vld [vmem:[%s1577_s1 + $0x58] sm:$0xff] }
   0xa   :  { %v145_v39 = vld [vmem:[%s1579_s3 + $0x90] sm:$0xff]  ;;  %v152_v42 = vld [vmem:[%s1579_s3 + $0xc8] sm:$0xff]  ;;  %v155_v43 = vld [vmem:[%s1579_s3 + $0xe0] sm:$0xff]  ;;  %v898_v46 = vpack.c.bf16 %v45_v41, %v44_v37 }
   0xb   :  { %913 = vmatpush1.bf16.msra.mxu1 %v912_v25  ;;  %v46_v44 = vld [vmem:[%s1577_s1 + $0x60] sm:$0xff]  ;;  %v920_v45 = vpack.c.bf16 %v148_v40, %v145_v39  ;;  %v47_v47 = vld [vmem:[%s1577_s1 + $0x68] sm:$0xff]  ;;  %v922_v48 = vpack.c.bf16 %v155_v43, %v152_v42  ;;  %v154_v50 = vld [vmem:[%s1579_s3 + $0xd8] sm:$0xff] }
   0xc   :  { %890 = vmatpush3.bf16.msra.mxu0 %v889_v14  ;;  %915 = vmatprep.subr.bf16.mxu1 %v914_v29  ;;  %v151_v49 = vld [vmem:[%s1579_s3 + $0xc0] sm:$0xff]  ;;  %v158_v51 = vld [vmem:[%s1579_s3 + $0xf8] sm:$0xff]  ;;  %v161_v52 = vld [vmem:[%s1579_s3 + $0x110] sm:$0xff] }
   0xd   :  { %891 = vmatprep.subr.bf16.mxu0 %v1070_v3 }
   0xf   :  { %917 = vmatpush1.bf16.msra.mxu1 %v916_v35 }
  0x10   :  { %893 = vmatpush3.bf16.msra.mxu0 %v892_v27  ;;  %919 = vmatprep.subr.bf16.mxu1 %v918_v38 }
  0x11   :  { %894 = vmatprep.subr.bf16.mxu0 %v1070_v3 }
  0x14   :  { %896 = vmatpush3.bf16.msra.mxu0 %v895_v36 }
  0x15   :  { %897 = vmatprep.subr.bf16.mxu0 %v1070_v3 }
  0x16   :  { %14 = vsyncpa [#allocation3], 0  ;;  %921 = vmatpush1.bf16.msra.mxu1 %v920_v45  ;;  %v924_v53 = vpack.c.bf16 %v154_v50, %v151_v49  ;;  %v901_v54 = vpack.c.bf16 %v47_v47, %v46_v44  ;;  %v48_v55 = vld [vmem:[%s1577_s1 + $0x70] sm:$0xff]  ;;  %v926_v56 = vpack.c.bf16 %v161_v52, %v158_v51  ;;  %v160_v58 = vld [vmem:[%s1579_s3 + $0x108] sm:$0xff]  ;;  %s1073_s14 = smov [#allocation2]  }
  0x17   :  { %923 = vmatprep.subr.bf16.mxu1 %v922_v48  ;;  %v157_v57 = vld [vmem:[%s1579_s3 + $0xf0] sm:$0xff]  ;;  %v49_v59 = vld [vmem:[%s1577_s1 + $0x78] sm:$0xff]  ;;  %v164_v60 = vld [vmem:[%s1579_s3 + $0x128] sm:$0xff] }
  0x18   :  { %899 = vmatpush3.bf16.msra.mxu0 %v898_v46  ;;  %v167_v61 = vld [vmem:[%s1579_s3 + $0x140] sm:$0xff]  ;;  %v928_v62 = vpack.c.bf16 %v160_v58, %v157_v57  ;;  %v904_v63 = vpack.c.bf16 %v49_v59, %v48_v55  ;;  %v129_v0 = vld [vmem:[%s1579_s3 + $0x10] sm:$0xff]  ;;  %v166_v4 = vld [vmem:[%s1579_s3 + $0x138] sm:$0xff] }
  0x19   :  { %900 = vmatprep.subr.bf16.mxu0 %v1070_v3  ;;  %v930_v1 = vpack.c.bf16 %v167_v61, %v164_v60  ;;  %v163_v2 = vld [vmem:[%s1579_s3 + $0x120] sm:$0xff]  ;;  %v132_v5 = vld [vmem:[%s1579_s3 + $0x28] sm:$0xff]  ;;  %v170_v7 = vld [vmem:[%s1579_s3 + $0x158] sm:$0xff] }
  0x1a   :  { %925 = vmatpush1.bf16.msra.mxu1 %v924_v53  ;;  %v173_v8 = vld [vmem:[%s1579_s3 + $0x170] sm:$0xff]  ;;  %v932_v9 = vpack.c.bf16 %v166_v4, %v163_v2  ;;  %v33_v10 = vld [vmem:[%s1576_s0] sm:$0xff]  ;;  %v939_v11 = vpack.c.bf16 %v132_v5, %v129_v0  ;;  %v138_v14 = vld [vmem:[%s1579_s3 + $0x58] sm:$0xff] }
  0x1b   :  { %927 = vmatprep.subr.bf16.mxu1 %v926_v56  ;;  %v934_v12 = vpack.c.bf16 %v173_v8, %v170_v7  ;;  %v135_v13 = vld [vmem:[%s1579_s3 + $0x40] sm:$0xff]  ;;  %v141_v16 = vld [vmem:[%s1579_s3 + $0x70] sm:$0xff]  ;;  %v144_v17 = vld [vmem:[%s1579_s3 + $0x88] sm:$0xff] }
  0x1c   :  { %902 = vmatpush3.bf16.msra.mxu0 %v901_v54  ;;  %v942_v15 = vpack.c.bf16 %v138_v14, %v135_v13  ;;  %v945_v18 = vpack.c.bf16 %v144_v17, %v141_v16  ;;  %v147_v19 = vld [vmem:[%s1579_s3 + $0xa0] sm:$0xff]  ;;  %v150_v20 = vld [vmem:[%s1579_s3 + $0xb8] sm:$0xff]  ;;  %v153_v22 = vld [vmem:[%s1579_s3 + $0xd0] sm:$0xff] }
  0x1d   :  { %903 = vmatprep.subr.bf16.mxu0 %v1070_v3  ;;  %v948_v21 = vpack.c.bf16 %v150_v20, %v147_v19  ;;  %v156_v23 = vld [vmem:[%s1579_s3 + $0xe8] sm:$0xff]  ;;  %v159_v25 = vld [vmem:[%s1579_s3 + $0x100] sm:$0xff]  ;;  %v162_v26 = vld [vmem:[%s1579_s3 + $0x118] sm:$0xff] }
  0x1e   :  { %929 = vmatpush1.bf16.msra.mxu1 %v928_v62  ;;  %v951_v24 = vpack.c.bf16 %v156_v23, %v153_v22  ;;  %v954_v27 = vpack.c.bf16 %v162_v26, %v159_v25  ;;  %v165_v28 = vld [vmem:[%s1579_s3 + $0x130] sm:$0xff]  ;;  %v168_v29 = vld [vmem:[%s1579_s3 + $0x148] sm:$0xff]  ;;  %v171_v33 = vld [vmem:[%s1579_s3 + $0x160] sm:$0xff] }
  0x1f   :  { %931 = vmatprep.subr.bf16.mxu1 %v930_v1  ;;  %v957_v30 = vpack.c.bf16 %v168_v29, %v165_v28  ;;  %v169_v31 = vld [vmem:[%s1579_s3 + $0x150] sm:$0xff]  ;;  %v172_v32 = vld [vmem:[%s1579_s3 + $0x168] sm:$0xff]  ;;  %v174_v35 = vld [vmem:[%s1579_s3 + $0x178] sm:$0xff] }
  0x20   :  { %905 = vmatpush3.bf16.msra.mxu0 %v904_v63  ;;  %v936_v34 = vpack.c.bf16 %v172_v32, %v169_v31  ;;  %v960_v36 = vpack.c.bf16 %v174_v35, %v171_v33  ;;  %v349_v37 = vld [vmem:[%s1581_s5 + $0x80] sm:$0xff]  ;;  %v350_v38 = vld [vmem:[%s1581_s5 + $0x88] sm:$0xff]  ;;  %v351_v45 = vld [vmem:[%s1581_s5 + $0x90] sm:$0xff] }
  0x21   :  { %938 = vmatprep.subr.bf16.mxu0 %v1070_v3  ;;  %v962_v39 = vpack.c.bf16 %v350_v38, %v349_v37  ;;  %v365_v40 = vld [vmem:[%s1581_s5 + $0x100] sm:$0xff]  ;;  %v366_v41 = vld [vmem:[%s1581_s5 + $0x108] sm:$0xff]  ;;  %v352_v46 = vld [vmem:[%s1581_s5 + $0x98] sm:$0xff] }
  0x22   :  { %933 = vmatpush1.bf16.msra.mxu1 %v932_v9  ;;  %v333_v42 = vld [vmem:[%s1581_s5] sm:$0xff]  ;;  %v334_v43 = vld [vmem:[%s1581_s5 + $0x8] sm:$0xff]  ;;  %v995_v48 = vpack.c.bf16 %v366_v41, %v365_v40  ;;  %v367_v50 = vld [vmem:[%s1581_s5 + $0x110] sm:$0xff]  ;;  %v966_v54 = vpack.c.bf16 %v352_v46, %v351_v45 }
  0x23   :  { %775 = vmatmul.mubr.f32.vlgmr.msra.gmra.mrb[0].mxu0 %v33_v10  ;;  %935 = vmatprep.subr.bf16.mxu1 %v934_v12  ;;  %v636_v44 = vld [vmem:[%s1578_s2] ss:$0 sm:$0xff]  ;;  %v964_v49 = vpack.c.bf16 %v334_v43, %v333_v42  ;;  %v368_v53 = vld [vmem:[%s1581_s5 + $0x118] sm:$0xff]  ;;  %v335_v55 = vld [vmem:[%s1581_s5 + $0x10] sm:$0xff] }
  0x24   :  { %940 = vmatpush3.bf16.msra.mxu0 %v939_v11  ;;  %809 = vmatprep.mubr.msk.f32.mxu0 %vm1071_vm0, %v1072_v6  ;;  %v336_v56 = vld [vmem:[%s1581_s5 + $0x18] sm:$0xff]  ;;  %v353_v57 = vld [vmem:[%s1581_s5 + $0xa0] sm:$0xff]  ;;  %v354_v58 = vld [vmem:[%s1581_s5 + $0xa8] sm:$0xff]  ;;  %v998_v59 = vpack.c.bf16 %v368_v53, %v367_v50 }
  0x25   :  { %941 = vmatprep.subr.bf16.mxu0 %v1070_v3  ;;  %v968_v60 = vpack.c.bf16 %v336_v56, %v335_v55  ;;  %v369_v61 = vld [vmem:[%s1581_s5 + $0x120] sm:$0xff]  ;;  %v370_v62 = vld [vmem:[%s1581_s5 + $0x128] sm:$0xff]  ;;  %v970_v63 = vpack.c.bf16 %v354_v58, %v353_v57  ;;  %v355_v2 = vld [vmem:[%s1581_s5 + $0xb0] sm:$0xff] }
  0x26   :  { %937 = vmatpush1.bf16.msra.mxu1 %v936_v34  ;;  %v337_v0 = vld [vmem:[%s1581_s5 + $0x20] sm:$0xff]  ;;  %v338_v1 = vld [vmem:[%s1581_s5 + $0x28] sm:$0xff]  ;;  %v356_v4 = vld [vmem:[%s1581_s5 + $0xb8] sm:$0xff]  ;;  %v1001_v5 = vpack.c.bf16 %v370_v62, %v369_v61 }
  0x27   :  { %963 = vmatprep.subr.bf16.mxu1 %v962_v39  ;;  %v972_v7 = vpack.c.bf16 %v338_v1, %v337_v0  ;;  %v371_v8 = vld [vmem:[%s1581_s5 + $0x130] sm:$0xff]  ;;  %v372_v9 = vld [vmem:[%s1581_s5 + $0x138] sm:$0xff]  ;;  %v974_v10 = vpack.c.bf16 %v356_v4, %v355_v2  ;;  %v357_v13 = vld [vmem:[%s1581_s5 + $0xc0] sm:$0xff] }
  0x28   :  { %943 = vmatpush3.bf16.msra.mxu0 %v942_v15  ;;  %v339_v11 = vld [vmem:[%s1581_s5 + $0x30] sm:$0xff]  ;;  %v340_v12 = vld [vmem:[%s1581_s5 + $0x38] sm:$0xff]  ;;  %v358_v14 = vld [vmem:[%s1581_s5 + $0xc8] sm:$0xff]  ;;  %v1004_v15 = vpack.c.bf16 %v372_v9, %v371_v8 }
  0x29   :  { %944 = vmatprep.subr.bf16.mxu0 %v1070_v3  ;;  %v976_v16 = vpack.c.bf16 %v340_v12, %v339_v11  ;;  %v373_v17 = vld [vmem:[%s1581_s5 + $0x140] sm:$0xff]  ;;  %v978_v19 = vpack.c.bf16 %v358_v14, %v357_v13  ;;  %v359_v22 = vld [vmem:[%s1581_s5 + $0xd0] sm:$0xff]  ;;  %v360_v23 = vld [vmem:[%s1581_s5 + $0xd8] sm:$0xff] }
  0x2a   :  { %v341_v20 = vld [vmem:[%s1581_s5 + $0x40] sm:$0xff]  ;;  %v375_v26 = vld [vmem:[%s1581_s5 + $0x150] sm:$0xff]  ;;  %v982_v28 = vpack.c.bf16 %v360_v23, %v359_v22  ;;  %v362_v32 = vld [vmem:[%s1581_s5 + $0xe8] sm:$0xff] }
  0x2b   :  { %v343_v29 = vld [vmem:[%s1581_s5 + $0x50] sm:$0xff]  ;;  %v361_v31 = vld [vmem:[%s1581_s5 + $0xe0] sm:$0xff]  ;;  %v346_v39 = vld [vmem:[%s1581_s5 + $0x68] sm:$0xff] }
  0x2c   :  { %946 = vmatpush3.bf16.msra.mxu0 %v945_v18  ;;  %v374_v18 = vld [vmem:[%s1581_s5 + $0x148] sm:$0xff]  ;;  %v377_v35 = vld [vmem:[%s1581_s5 + $0x160] sm:$0xff]  ;;  %v986_v37 = vpack.c.bf16 %v362_v32, %v361_v31  ;;  %v379_v42 = vld [vmem:[%s1581_s5 + $0x170] sm:$0xff] }
  0x2d   :  { %947 = vmatprep.subr.bf16.mxu0 %v1070_v3  ;;  %v345_v38 = vld [vmem:[%s1581_s5 + $0x60] sm:$0xff]  ;;  %v380_v43 = vld [vmem:[%s1581_s5 + $0x178] sm:$0xff]  ;;  %v363_v45 = vld [vmem:[%s1581_s5 + $0xf0] sm:$0xff] }
  0x2e   :  { %v988_v41 = vpack.c.bf16 %v346_v39, %v345_v38  ;;  %v364_v46 = vld [vmem:[%s1581_s5 + $0xf8] sm:$0xff]  ;;  %v529_v61 = vld [vmem:[%s1583_s7 + $0x8] sm:$0xff]  ;;  %v530_v8 = vld [vmem:[%s1583_s7 + $0x10] sm:$0xff] }
  0x2f   :  { %v531_v9 = vld [vmem:[%s1583_s7 + $0x18] sm:$0xff]  ;;  %v532_v11 = vld [vmem:[%s1583_s7 + $0x20] sm:$0xff]  ;;  %v533_v12 = vld [vmem:[%s1583_s7 + $0x28] sm:$0xff] }
  0x30   :  { %949 = vmatpush3.bf16.msra.mxu0 %v948_v21  ;;  %v342_v21 = vld [vmem:[%s1581_s5 + $0x48] sm:$0xff]  ;;  %v1025_v13 = vpack.c.bf16 %v533_v12, %v532_v11  ;;  %v534_v14 = vld [vmem:[%s1583_s7 + $0x30] sm:$0xff]  ;;  %v540_v22 = vld [vmem:[%s1583_s7 + $0x60] sm:$0xff] }
  0x31   :  { %950 = vmatprep.subr.bf16.mxu0 %v1070_v3  ;;  %v980_v25 = vpack.c.bf16 %v342_v21, %v341_v20  ;;  %v539_v20 = vld [vmem:[%s1583_s7 + $0x58] sm:$0xff]  ;;  %v541_v23 = vld [vmem:[%s1583_s7 + $0x68] sm:$0xff]  ;;  %v637_v31 = vld [vmem:[%s1582_s6] ss:$0 sm:$0xff] }
  0x34   :  { %952 = vmatpush3.bf16.msra.mxu0 %v951_v24  ;;  %v1007_v24 = vpack.c.bf16 %v374_v18, %v373_v17  ;;  %v537_v17 = vld [vmem:[%s1583_s7 + $0x48] sm:$0xff] }
  0x35   :  { %953 = vmatprep.subr.bf16.mxu0 %v1070_v3 }
  0x38   :  { %955 = vmatpush3.bf16.msra.mxu0 %v954_v27  ;;  %v376_v27 = vld [vmem:[%s1581_s5 + $0x158] sm:$0xff] }
  0x39   :  { %956 = vmatprep.subr.bf16.mxu0 %v1070_v3  ;;  %v1010_v33 = vpack.c.bf16 %v376_v27, %v375_v26  ;;  %v543_v26 = vld [vmem:[%s1583_s7 + $0x78] sm:$0xff] }
  0x3c   :  { %958 = vmatpush3.bf16.msra.mxu0 %v957_v30  ;;  %v344_v30 = vld [vmem:[%s1581_s5 + $0x58] sm:$0xff] }
  0x3d   :  { %959 = vmatprep.subr.bf16.mxu0 %v1070_v3  ;;  %v984_v34 = vpack.c.bf16 %v344_v30, %v343_v29 }
  0x40   :  { %961 = vmatpush3.bf16.msra.mxu0 %v960_v36  ;;  %v378_v36 = vld [vmem:[%s1581_s5 + $0x168] sm:$0xff] }
  0x41   :  { %994 = vmatprep.subr.bf16.mxu0 %v1070_v3  ;;  %v1013_v40 = vpack.c.bf16 %v378_v36, %v377_v35  ;;  %v638_v35 = vld [vmem:[%s1584_s8] ss:$0 sm:$0xff] }
  0xf6   :  { %v123_v47 = vpop.f32.mrb[0].mxu0 }
  0xf7   :  { %v124_v51 = vadd.f32 %v636_v44, %v123_v47  ;;  %v776_v52 = vpop.f32.mrb[1].mxu0  ;;  %v1016_v44 = vpack.c.bf16 %v380_v43, %v379_v42  ;;  %v990_v47 = vpack.c.bf16 %v364_v46, %v363_v45 }
  0xf9   :  { %257 = vmatmul.mubr.f32.vlgmr.msra.gmra.mrb[0].mxu1 %v124_v51  ;;  %810 = vmatmul.mubr.f32.vlgmr.msra.gmra.mrb[2].mxu0 %v124_v51  ;;  %v177_v51 = vlaneseq }
  0xfa   :  { %996 = vmatpush3.bf16.msra.mxu0 %v995_v48  ;;  %965 = vmatpush3.bf16.msra.mxu1 %v964_v49  ;;  %v347_v48 = vld [vmem:[%s1581_s5 + $0x70] sm:$0xff]  ;;  %v348_v49 = vld [vmem:[%s1581_s5 + $0x78] sm:$0xff] }
  0xfb   :  { %997 = vmatprep.subr.bf16.mxu0 %v1070_v3  ;;  %967 = vmatprep.subr.bf16.mxu1 %v966_v54  ;;  %v992_v50 = vpack.c.bf16 %v348_v49, %v347_v48  ;;  %v178_v52 = vshrl.u32 %v177_v51, 7  ;;  %v175_v54 = vld [vmem:[%s1580_s4] sm:$0x7] }
  0xfc   :  { %844 = vmatprep.mubr.msk.f32.mxu0 %vm1071_vm0, %v1072_v6 }
  0xfd   :  { %v187_v53 = vsub.s32 2, %v178_v52  ;;  %v183_v55 = vsub.s32 1, %v178_v52  ;;  %v179_v56 = vsub.s32 0, %v178_v52 }
  0xfe   :  { %999 = vmatpush3.bf16.msra.mxu0 %v998_v59  ;;  %969 = vmatpush3.bf16.msra.mxu1 %v968_v60  ;;  %v528_v60 = vld [vmem:[%s1583_s7] sm:$0xff] }
  0xff   :  { %1000 = vmatprep.subr.bf16.mxu0 %v1070_v3  ;;  %971 = vmatprep.subr.bf16.mxu1 %v970_v63  ;;  %v188_v57 = vrot.slane %v175_v54, %v187_v53  ;;  %v184_v58 = vrot.slane %v175_v54, %v183_v55  ;;  %v180_v59 = vrot.slane %v175_v54, %v179_v56 }
 0x102   :  { %1002 = vmatpush3.bf16.msra.mxu0 %v1001_v5  ;;  %973 = vmatpush3.bf16.msra.mxu1 %v972_v7  ;;  %v1019_v5 = vpack.c.bf16 %v529_v61, %v528_v60 }
 0x103   :  { %1003 = vmatprep.subr.bf16.mxu0 %v1070_v3  ;;  %975 = vmatprep.subr.bf16.mxu1 %v974_v10  ;;  %v1022_v10 = vpack.c.bf16 %v531_v9, %v530_v8 }
 0x106   :  { %1005 = vmatpush3.bf16.msra.mxu0 %v1004_v15  ;;  %977 = vmatpush3.bf16.msra.mxu1 %v976_v16  ;;  %v536_v16 = vld [vmem:[%s1583_s7 + $0x40] sm:$0xff] }
 0x107   :  { %1006 = vmatprep.subr.bf16.mxu0 %v1070_v3  ;;  %979 = vmatprep.subr.bf16.mxu1 %v978_v19  ;;  %v1031_v18 = vpack.c.bf16 %v537_v17, %v536_v16  ;;  %v538_v19 = vld [vmem:[%s1583_s7 + $0x50] sm:$0xff] }
 0x108   :  { %v1034_v21 = vpack.c.bf16 %v539_v20, %v538_v19 }
 0x10a   :  { %1008 = vmatpush3.bf16.msra.mxu0 %v1007_v24  ;;  %981 = vmatpush3.bf16.msra.mxu1 %v980_v25  ;;  %v1037_v24 = vpack.c.bf16 %v541_v23, %v540_v22  ;;  %v542_v25 = vld [vmem:[%s1583_s7 + $0x70] sm:$0xff] }
 0x10b   :  { %1009 = vmatprep.subr.bf16.mxu0 %v1070_v3  ;;  %983 = vmatprep.subr.bf16.mxu1 %v982_v28  ;;  %v1040_v27 = vpack.c.bf16 %v543_v26, %v542_v25 }
 0x10e   :  { %1011 = vmatpush3.bf16.msra.mxu0 %v1010_v33  ;;  %985 = vmatpush3.bf16.msra.mxu1 %v984_v34 }
 0x10f   :  { %1012 = vmatprep.subr.bf16.mxu0 %v1070_v3  ;;  %987 = vmatprep.subr.bf16.mxu1 %v986_v37 }
 0x112   :  { %1014 = vmatpush3.bf16.msra.mxu0 %v1013_v40  ;;  %989 = vmatpush3.bf16.msra.mxu1 %v988_v41 }
 0x113   :  { %1015 = vmatprep.subr.bf16.mxu0 %v1070_v3  ;;  %991 = vmatprep.subr.bf16.mxu1 %v990_v47 }
 0x116   :  { %1017 = vmatpush3.bf16.msra.mxu0 %v1016_v44  ;;  %993 = vmatpush3.bf16.msra.mxu1 %v992_v50 }
 0x117   :  { %1018 = vmatprep.subr.bf16.mxu1 %v1070_v3 }
 0x1cc   :  { %v258_v62 = vpop.f32.mrb[0].mxu1  ;;  %v329_v63 = vpop.f32.mrb[2].mxu0 }
 0x1cd   :  { %v330_v0 = vadd.f32 %v329_v63, %v188_v57  ;;  %v260_v1 = vpop.f32.mrb[1].mxu1  ;;  %v811_v2 = vpop.f32.mrb[3].mxu0  ;;  %v259_v7 = vadd.f32 %v258_v62, %v180_v59 }
 0x1ce   :  { %v261_v4 = vadd.f32 %v260_v1, %v184_v58 }
 0x1cf   :  { %845 = vmatmul.mubr.f32.vlgmr.msra.gmra.mrb[4].mxu0 %v330_v0 }
 0x1d0   :  { %452 = vmatprep.mubr.f32.mxu1 %v261_v4 }
 0x1d1   :  { %453 = vmatmul.mubr.f32.vlgmr.msra.gmra.mrb[2].mxu1 %v259_v7 }
 0x1d2   :  { %1020 = vmatpush3.bf16.msra.mxu1 %v1019_v5  ;;  %879 = vmatprep.mubr.msk.f32.mxu1 %vm1071_vm0, %v1072_v6  ;;  %v535_v6 = vld [vmem:[%s1583_s7 + $0x38] sm:$0xff]  ;;  %s628_s7 = sshll.u32 %s1073_s14, 4  ;;  %s629_s7 = int_to_ptr.vmem [resolvable:$true] %s628_s7 }
 0x1d3   :  { %1021 = vmatprep.subr.bf16.mxu1 %v1070_v3  ;;  %v1028_v15 = vpack.c.bf16 %v535_v6, %v534_v14  ;;  %s1046_s15 = scalar_lea.vmem %s629_s7, 128  ;;  %p1051_p1 = scmp.lt.s32.totalorder %s629_s7, %s629_s7 }
 0x1d4   :  { %p1047_p0 = scmp.ne.s32.totalorder %s629_s7, %s1046_s15  ;;  %p1052_p2 = scmp.lt.s32.totalorder %s1046_s15, %s1046_s15 }
 0x1d6   :  { %1023 = vmatpush3.bf16.msra.mxu1 %v1022_v10  ;;  %p1053_p3 = por %p1052_p2, %p1051_p1 }
 0x1d7   :  { %1024 = vmatprep.subr.bf16.mxu1 %v1070_v3 }
 0x1d8   :  { %p1054_p4 = pnand %p1053_p3, %p1047_p0 }
 0x1da   :  { %1026 = vmatpush3.bf16.msra.mxu1 %v1025_v13 }
 0x1db   :  { %1027 = vmatprep.subr.bf16.mxu1 %v1070_v3 }
 0x1de   :  { %1029 = vmatpush3.bf16.msra.mxu1 %v1028_v15 }
 0x1df   :  { %1030 = vmatprep.subr.bf16.mxu1 %v1070_v3 }
 0x1e2   :  { %1032 = vmatpush3.bf16.msra.mxu1 %v1031_v18 }
 0x1e3   :  { %1033 = vmatprep.subr.bf16.mxu1 %v1070_v3 }
 0x1e6   :  { %1035 = vmatpush3.bf16.msra.mxu1 %v1034_v21 }
 0x1e7   :  { %1036 = vmatprep.subr.bf16.mxu1 %v1070_v3 }
 0x1ea   :  { %1038 = vmatpush3.bf16.msra.mxu1 %v1037_v24 }
 0x1eb   :  { %1039 = vmatprep.subr.bf16.mxu1 %v1070_v3 }
 0x1ee   :  { %1041 = vmatpush3.bf16.msra.mxu1 %v1040_v27 }
 0x2a2   :  { %v524_v28 = vpop.f32.mrb[4].mxu0 }
 0x2a3   :  { %v846_v29 = vpop.f32.mrb[5].mxu0 }
 0x2a4   :  { %v705_v30 = vpop.f32.mrb[2].mxu1 }
 0x2a5   :  { %v706_v32 = vpop.f32.mrb[3].mxu1 }
 0x2a6   :  { %v707_v33 = vadd.f32 %v706_v32, %v705_v30 }
 0x2a8   :  { %v455_v3 = vadd.f32 %v707_v33, %v637_v31 }
 0x2aa   :  { %v525_v34 = vadd.f32 %v524_v28, %v455_v3 }
 0x2ac   :  { %880 = vmatmul.mubr.f32.vlgmr.msra.gmra.mrb[4].mxu1 %v525_v34 }
 0x37f   :  { %v617_v36 = vpop.f32.mrb[4].mxu1 }
 0x380   :  { %v618_v37 = vadd.f32 %v638_v35, %v617_v36  ;;  %v881_v38 = vpop.f32.mrb[5].mxu1 }
 0x382   :  { %621 = vst [vmem:[#allocation2] sm:$0xff] %v618_v37 }
 0x383   :  { %1057 = shalt.err (!%p1054_p4)
}
 0x384   :  { %s1058_s17 = scalar_lea.hbm %s1585_s9, 128 }
 0x385   :  { %p1059_p5 = scmp.ne.s32.totalorder %s1585_s9, %s1058_s17  ;;  %p1062_p6 = scmp.lt.u32.totalorder %s1058_s17, %s1585_s9 }
 0x387   :  { %p1064_p7 = pnand %p1062_p6, %p1059_p5 }
 0x389   :  { %1067 = shalt.err (!%p1064_p7)
}
 0x38a   :  { %631 = dma.vmem_to_hbm [thread:$0]  %s629_s7, 128, %s1585_s9, [#allocation3]  }
 0x38b   :  { %1068 = dma.done.wait [#allocation3], 128  }
 0x38c   :  { %1069 = vsyncadd [#allocation3], 4294967168 }
 0x38d   :  { %635 = vsyncpa [#allocation3], 1 }

</bundles_post_ra>
